<compile_context>
chip_gen: v7x
topology: tpu7x:2x2x1
jax: 0.10.0
libtpu: 0.0.40
codegen_flags: <defaults>
</compile_context>

<pallas_src>
import functools

import jax
import jax.numpy as jnp
from jax import lax
from jax.experimental import pallas as pl
from jax.experimental.pallas import tpu as pltpu


def _patchify_kernel(x_ref, o_ref, t_ref, *, C, W, p1, p2, R):
    """One grid step = R patch-rows of one batch element.

    x_ref : (1, C, R*p1*W)   R*p1 image rows, (row, col) flattened on lanes
    o_ref : (1, R, w*P)      lane-dense output slab, P = p1*p2*C
    t_ref : (R*p1*W, C)      VMEM scratch: channels-last transpose of the block
    """
    w = W // p2
    N = R * p1 * W

    # --- 1) consolidated channels->lanes transpose into the VMEM scratch ----
    # One 2-D transpose covers the whole R-patch-row block; large blocks are
    # chunked with a fori_loop so vreg live ranges stay bounded.
    CHUNK = 512
    if N <= CHUNK:
        t_ref[...] = x_ref[0].T                                   # (N, C)
    else:
        n_full = N // CHUNK

        def body(j, carry):
            s = pl.multiple_of(j * CHUNK, 128)
            t_ref[pl.ds(s, CHUNK), :] = x_ref[0, :, pl.ds(s, CHUNK)].T
            return carry

        lax.fori_loop(0, n_full, body, 0, unroll=2)
        rem = N - n_full * CHUNK
        if rem:
            s0 = n_full * CHUNK
            t_ref[pl.ds(s0, rem), :] = x_ref[0, :, pl.ds(s0, rem)].T

    # --- 2) assemble the lane-dense (R, w*P) output slab ---------------------
    # Each strided-sublane read gathers one (wi, a, bb) patch column across the
    # R patch rows; the lane-concat order (wi major, then a, bb, c) reproduces
    # the einops feature layout, and the store is one full-width slab write.
    pieces = []
    for wi in range(w):
        for a in range(p1):
            for bb in range(p2):
                start = a * W + wi * p2 + bb
                pieces.append(t_ref[pl.ds(start, R, stride=p1 * W), :])  # (R, C)
    o_ref[0] = jnp.concatenate(pieces, axis=-1)                   # (R, w*P)


def _pad(n, m):
    return -(-n // m) * m


def _block_vmem_bytes(r, w, p1, p2, C, W, itemsize):
    """Dtype-aware (sublane-packed) VMEM estimate for one choice of R."""
    sub = 8 * max(1, 4 // itemsize)               # f32: 8, bf16: 16, int8: 32
    P = p1 * p2 * C
    in_blk = _pad(C, sub) * _pad(r * p1 * W, 128) * itemsize
    out_blk = _pad(r, sub) * _pad(w * P, 128) * itemsize
    scratch = _pad(r * p1 * W, sub) * _pad(C, 128) * itemsize
    return 2 * (in_blk + out_blk) + scratch       # double-buffered blocks + scratch


def _vmem_cap_bytes():
    """Generation-aware scoped-VMEM cap (tight on v7x's 64 MiB physical VMEM)."""
    phys = 64 << 20
    try:
        info = pltpu.get_tpu_info()
        phys = int(getattr(info, "vmem_capacity_bytes", phys))
    except Exception:
        pass
    return (24 << 20) if phys <= (64 << 20) else (48 << 20)


def _choose_rows_per_step(n_batch, h, w, p1, p2, C, W, itemsize, budget_bytes):
    """Patch-rows per grid step.

    R must divide h; the output block's sublane dim (R) and the input block's
    lane dim (R*p1*W) must satisfy the (8, 128) BlockSpec rule (or cover the
    full axis, R == h).  Among valid R, take the largest whose double-buffered
    blocks + transpose scratch fit the VMEM budget, preferring choices that
    leave >= 8 total grid steps so both TensorCores (v7x) and the BlockSpec
    double-buffering have steps to overlap.
    """
    sub = 8 * max(1, 4 // itemsize)
    valid = [r for r in range(1, h + 1)
             if h % r == 0
             and ((r % sub == 0 and (r * p1 * W) % 128 == 0) or r == h)]
    affordable = ([r for r in valid
                   if _block_vmem_bytes(r, w, p1, p2, C, W, itemsize) <= budget_bytes]
                  or [min(valid)])  # TODO(synk): h with no aligned divisor may still be large
    pipelined = [r for r in affordable if n_batch * (h // r) >= 8]
    return max(pipelined or affordable)


def rearrange_patchify(x, p1=2, p2=2):
    """rearrange(x, 'b c (h p1) (w p2) -> b (h w) (p1 p2 c)', p1=p1, p2=p2)."""
    B, C, H, W = x.shape
    assert H % p1 == 0 and W % p2 == 0
    h, w = H // p1, W // p2
    P = p1 * p2 * C
    itemsize = jnp.dtype(x.dtype).itemsize

    cap = _vmem_cap_bytes()
    R = _choose_rows_per_step(B, h, w, p1, p2, C, W, itemsize,
                              budget_bytes=cap - (4 << 20))
    n_steps = h // R
    needed = _block_vmem_bytes(R, w, p1, p2, C, W, itemsize)
    vmem_bytes = int(needed + (4 << 20))          # no artificial 16 MiB floor

    kernel = functools.partial(_patchify_kernel, C=C, W=W, p1=p1, p2=p2, R=R)

    # Free, contiguous reshapes: (B,C,H,W)->(B,C,H*W) so a grid step sees its
    # R*p1 image rows as one lane-dense slab, and the lane-dense (B,h,w*P)
    # kernel output back to the einops (B, h*w, P) shape.
    x3 = x.reshape(B, C, H * W)

    out = pl.pallas_call(
        kernel,
        out_shape=jax.ShapeDtypeStruct((B, h, w * P), x.dtype),
        grid=(B, n_steps),
        in_specs=[pl.BlockSpec((1, C, R * p1 * W), lambda b, i: (b, 0, i))],
        out_specs=pl.BlockSpec((1, R, w * P), lambda b, i: (b, i, 0)),
        scratch_shapes=[pltpu.VMEM((R * p1 * W, C), x.dtype)],
        compiler_params=pltpu.CompilerParams(
            dimension_semantics=("parallel", "parallel"),
            vmem_limit_bytes=vmem_bytes,
        ),
    )(x3)
    return out.reshape(B, h * w, P)


def _reference(x, p1=2, p2=2):
    # pure-JAX einops-equivalent reference for verification
    B, C, H, W = x.shape
    h, w = H // p1, W // p2
    r = x.reshape(B, C, h, p1, w, p2)
    r = jnp.transpose(r, (0, 2, 4, 3, 5, 1))      # b h w p1 p2 c
    return r.reshape(B, h * w, p1 * p2 * C)


if __name__ == "__main__":
    key = jax.random.PRNGKey(0)
    B, C, H, W = 2, 4, 16, 16
    x = jax.random.normal(key, (B, C, H, W), dtype=jnp.float32)

    out = rearrange_patchify(x, p1=2, p2=2)
    out = jax.block_until_ready(out)

    ref = _reference(x, p1=2, p2=2)
    assert out.shape == ref.shape, (out.shape, ref.shape)
    assert jnp.allclose(out, ref), "Pallas rearrange does not match reference"

    print("KERNEL_OK")
</pallas_src>

<mosaic_0001>
module attributes {stable_mosaic.version = 11 : i64} {
  func.func @_patchify_kernel(%arg0: i32, %arg1: i32, %arg2: memref<1x4x256xf32, #tpu.memory_space<vmem>>, %arg3: memref<1x8x128xf32, #tpu.memory_space<vmem>>, %arg4: memref<256x4xf32, #tpu.memory_space<vmem>>) attributes {dimension_semantics = [#tpu.dimension_semantics<parallel>, #tpu.dimension_semantics<parallel>], iteration_bounds = array<i64: 2, 1>, scalar_prefetch = 0 : i64, scratch_operands = 1 : i64, tpu.core_type = #tpu.core_type<tc>, window_params = [{transform_indices = @transform_0, window_bounds = array<i64: 1, 4, 256>}, {transform_indices = @transform_1, window_bounds = array<i64: 1, 8, 128>}]} {
    %c0 = arith.constant 0 : index
    %c0_0 = arith.constant 0 : index
    %c0_1 = arith.constant 0 : index
    %0 = vector.load %arg2[%c0, %c0_0, %c0_1] : memref<1x4x256xf32, #tpu.memory_space<vmem>>, vector<1x4x256xf32>
    %1 = vector.shape_cast %0 : vector<1x4x256xf32> to vector<4x256xf32>
    %2 = tpu.transpose %1, [1, 0] : vector<4x256xf32> -> vector<256x4xf32>
    %c0_2 = arith.constant 0 : index
    %c0_3 = arith.constant 0 : index
    %3 = vector.load %arg4[%c0_2, %c0_3] : memref<256x4xf32, #tpu.memory_space<vmem>>, vector<256x4xf32>
    tpu.vector_store %arg4[%c0_2, %c0_3], %2 {strides = array<i32>} : memref<256x4xf32, #tpu.memory_space<vmem>>, vector<256x4xf32>,
    %c0_4 = arith.constant 0 : index
    %c0_5 = arith.constant 0 : index
    %4 = tpu.strided_load %arg4[%c0_4, %c0_5] {strides = array<i32: 32, 1>} : memref<256x4xf32, #tpu.memory_space<vmem>>, vector<8x4xf32>
    %c1 = arith.constant 1 : index
    %c0_6 = arith.constant 0 : index
    %5 = tpu.strided_load %arg4[%c1, %c0_6] {strides = array<i32: 32, 1>} : memref<256x4xf32, #tpu.memory_space<vmem>>, vector<8x4xf32>
    %c16 = arith.constant 16 : index
    %c0_7 = arith.constant 0 : index
    %6 = tpu.strided_load %arg4[%c16, %c0_7] {strides = array<i32: 32, 1>} : memref<256x4xf32, #tpu.memory_space<vmem>>, vector<8x4xf32>
    %c17 = arith.constant 17 : index
    %c0_8 = arith.constant 0 : index
    %7 = tpu.strided_load %arg4[%c17, %c0_8] {strides = array<i32: 32, 1>} : memref<256x4xf32, #tpu.memory_space<vmem>>, vector<8x4xf32>
    %c2 = arith.constant 2 : index
    %c0_9 = arith.constant 0 : index
    %8 = tpu.strided_load %arg4[%c2, %c0_9] {strides = array<i32: 32, 1>} : memref<256x4xf32, #tpu.memory_space<vmem>>, vector<8x4xf32>
    %c3 = arith.constant 3 : index
    %c0_10 = arith.constant 0 : index
    %9 = tpu.strided_load %arg4[%c3, %c0_10] {strides = array<i32: 32, 1>} : memref<256x4xf32, #tpu.memory_space<vmem>>, vector<8x4xf32>
    %c18 = arith.constant 18 : index
    %c0_11 = arith.constant 0 : index
    %10 = tpu.strided_load %arg4[%c18, %c0_11] {strides = array<i32: 32, 1>} : memref<256x4xf32, #tpu.memory_space<vmem>>, vector<8x4xf32>
    %c19 = arith.constant 19 : index
    %c0_12 = arith.constant 0 : index
    %11 = tpu.strided_load %arg4[%c19, %c0_12] {strides = array<i32: 32, 1>} : memref<256x4xf32, #tpu.memory_space<vmem>>, vector<8x4xf32>
    %c4 = arith.constant 4 : index
    %c0_13 = arith.constant 0 : index
    %12 = tpu.strided_load %arg4[%c4, %c0_13] {strides = array<i32: 32, 1>} : memref<256x4xf32, #tpu.memory_space<vmem>>, vector<8x4xf32>
    %c5 = arith.constant 5 : index
    %c0_14 = arith.constant 0 : index
    %13 = tpu.strided_load %arg4[%c5, %c0_14] {strides = array<i32: 32, 1>} : memref<256x4xf32, #tpu.memory_space<vmem>>, vector<8x4xf32>
    %c20 = arith.constant 20 : index
    %c0_15 = arith.constant 0 : index
    %14 = tpu.strided_load %arg4[%c20, %c0_15] {strides = array<i32: 32, 1>} : memref<256x4xf32, #tpu.memory_space<vmem>>, vector<8x4xf32>
    %c21 = arith.constant 21 : index
    %c0_16 = arith.constant 0 : index
    %15 = tpu.strided_load %arg4[%c21, %c0_16] {strides = array<i32: 32, 1>} : memref<256x4xf32, #tpu.memory_space<vmem>>, vector<8x4xf32>
    %c6 = arith.constant 6 : index
    %c0_17 = arith.constant 0 : index
    %16 = tpu.strided_load %arg4[%c6, %c0_17] {strides = array<i32: 32, 1>} : memref<256x4xf32, #tpu.memory_space<vmem>>, vector<8x4xf32>
    %c7 = arith.constant 7 : index
    %c0_18 = arith.constant 0 : index
    %17 = tpu.strided_load %arg4[%c7, %c0_18] {strides = array<i32: 32, 1>} : memref<256x4xf32, #tpu.memory_space<vmem>>, vector<8x4xf32>
    %c22 = arith.constant 22 : index
    %c0_19 = arith.constant 0 : index
    %18 = tpu.strided_load %arg4[%c22, %c0_19] {strides = array<i32: 32, 1>} : memref<256x4xf32, #tpu.memory_space<vmem>>, vector<8x4xf32>
    %c23 = arith.constant 23 : index
    %c0_20 = arith.constant 0 : index
    %19 = tpu.strided_load %arg4[%c23, %c0_20] {strides = array<i32: 32, 1>} : memref<256x4xf32, #tpu.memory_space<vmem>>, vector<8x4xf32>
    %c8 = arith.constant 8 : index
    %c0_21 = arith.constant 0 : index
    %20 = tpu.strided_load %arg4[%c8, %c0_21] {strides = array<i32: 32, 1>} : memref<256x4xf32, #tpu.memory_space<vmem>>, vector<8x4xf32>
    %c9 = arith.constant 9 : index
    %c0_22 = arith.constant 0 : index
    %21 = tpu.strided_load %arg4[%c9, %c0_22] {strides = array<i32: 32, 1>} : memref<256x4xf32, #tpu.memory_space<vmem>>, vector<8x4xf32>
    %c24 = arith.constant 24 : index
    %c0_23 = arith.constant 0 : index
    %22 = tpu.strided_load %arg4[%c24, %c0_23] {strides = array<i32: 32, 1>} : memref<256x4xf32, #tpu.memory_space<vmem>>, vector<8x4xf32>
    %c25 = arith.constant 25 : index
    %c0_24 = arith.constant 0 : index
    %23 = tpu.strided_load %arg4[%c25, %c0_24] {strides = array<i32: 32, 1>} : memref<256x4xf32, #tpu.memory_space<vmem>>, vector<8x4xf32>
    %c10 = arith.constant 10 : index
    %c0_25 = arith.constant 0 : index
    %24 = tpu.strided_load %arg4[%c10, %c0_25] {strides = array<i32: 32, 1>} : memref<256x4xf32, #tpu.memory_space<vmem>>, vector<8x4xf32>
    %c11 = arith.constant 11 : index
    %c0_26 = arith.constant 0 : index
    %25 = tpu.strided_load %arg4[%c11, %c0_26] {strides = array<i32: 32, 1>} : memref<256x4xf32, #tpu.memory_space<vmem>>, vector<8x4xf32>
    %c26 = arith.constant 26 : index
    %c0_27 = arith.constant 0 : index
    %26 = tpu.strided_load %arg4[%c26, %c0_27] {strides = array<i32: 32, 1>} : memref<256x4xf32, #tpu.memory_space<vmem>>, vector<8x4xf32>
    %c27 = arith.constant 27 : index
    %c0_28 = arith.constant 0 : index
    %27 = tpu.strided_load %arg4[%c27, %c0_28] {strides = array<i32: 32, 1>} : memref<256x4xf32, #tpu.memory_space<vmem>>, vector<8x4xf32>
    %c12 = arith.constant 12 : index
    %c0_29 = arith.constant 0 : index
    %28 = tpu.strided_load %arg4[%c12, %c0_29] {strides = array<i32: 32, 1>} : memref<256x4xf32, #tpu.memory_space<vmem>>, vector<8x4xf32>
    %c13 = arith.constant 13 : index
    %c0_30 = arith.constant 0 : index
    %29 = tpu.strided_load %arg4[%c13, %c0_30] {strides = array<i32: 32, 1>} : memref<256x4xf32, #tpu.memory_space<vmem>>, vector<8x4xf32>
    %c28 = arith.constant 28 : index
    %c0_31 = arith.constant 0 : index
    %30 = tpu.strided_load %arg4[%c28, %c0_31] {strides = array<i32: 32, 1>} : memref<256x4xf32, #tpu.memory_space<vmem>>, vector<8x4xf32>
    %c29 = arith.constant 29 : index
    %c0_32 = arith.constant 0 : index
    %31 = tpu.strided_load %arg4[%c29, %c0_32] {strides = array<i32: 32, 1>} : memref<256x4xf32, #tpu.memory_space<vmem>>, vector<8x4xf32>
    %c14 = arith.constant 14 : index
    %c0_33 = arith.constant 0 : index
    %32 = tpu.strided_load %arg4[%c14, %c0_33] {strides = array<i32: 32, 1>} : memref<256x4xf32, #tpu.memory_space<vmem>>, vector<8x4xf32>
    %c15 = arith.constant 15 : index
    %c0_34 = arith.constant 0 : index
    %33 = tpu.strided_load %arg4[%c15, %c0_34] {strides = array<i32: 32, 1>} : memref<256x4xf32, #tpu.memory_space<vmem>>, vector<8x4xf32>
    %c30 = arith.constant 30 : index
    %c0_35 = arith.constant 0 : index
    %34 = tpu.strided_load %arg4[%c30, %c0_35] {strides = array<i32: 32, 1>} : memref<256x4xf32, #tpu.memory_space<vmem>>, vector<8x4xf32>
    %c31 = arith.constant 31 : index
    %c0_36 = arith.constant 0 : index
    %35 = tpu.strided_load %arg4[%c31, %c0_36] {strides = array<i32: 32, 1>} : memref<256x4xf32, #tpu.memory_space<vmem>>, vector<8x4xf32>
    %36 = tpu.concatenate %4, %5, %6, %7, %8, %9, %10, %11, %12, %13, %14, %15, %16, %17, %18, %19 in 1 : vector<8x4xf32>, vector<8x4xf32>, vector<8x4xf32>, vector<8x4xf32>, vector<8x4xf32>, vector<8x4xf32>, vector<8x4xf32>, vector<8x4xf32>, vector<8x4xf32>, vector<8x4xf32>, vector<8x4xf32>, vector<8x4xf32>, vector<8x4xf32>, vector<8x4xf32>, vector<8x4xf32>, vector<8x4xf32> -> vector<8x64xf32>
    %37 = tpu.concatenate %20, %21, %22, %23, %24, %25, %26, %27, %28, %29, %30, %31, %32, %33, %34, %35 in 1 : vector<8x4xf32>, vector<8x4xf32>, vector<8x4xf32>, vector<8x4xf32>, vector<8x4xf32>, vector<8x4xf32>, vector<8x4xf32>, vector<8x4xf32>, vector<8x4xf32>, vector<8x4xf32>, vector<8x4xf32>, vector<8x4xf32>, vector<8x4xf32>, vector<8x4xf32>, vector<8x4xf32>, vector<8x4xf32> -> vector<8x64xf32>
    %38 = tpu.concatenate %36, %37 in 1 : vector<8x64xf32>, vector<8x64xf32> -> vector<8x128xf32>
    %c0_37 = arith.constant 0 : index
    %c0_38 = arith.constant 0 : index
    %c0_39 = arith.constant 0 : index
    %39 = vector.load %arg3[%c0_37, %c0_38, %c0_39] : memref<1x8x128xf32, #tpu.memory_space<vmem>>, vector<1x8x128xf32>
    %40 = vector.shape_cast %39 : vector<1x8x128xf32> to vector<8x128xf32>
    %41 = vector.shape_cast %38 : vector<8x128xf32> to vector<1x8x128xf32>
    tpu.vector_store %arg3[%c0_37, %c0_38, %c0_39], %41 {strides = array<i32>} : memref<1x8x128xf32, #tpu.memory_space<vmem>>, vector<1x8x128xf32>,
    return
  }
  func.func @transform_0(%arg0: i32, %arg1: i32) -> (i32, i32, i32) {
    %c0_i32 = arith.constant 0 : i32
    %c0_i32_0 = arith.constant 0 : i32
    return %arg0, %c0_i32, %arg1 : i32, i32, i32
  }
  func.func @transform_1(%arg0: i32, %arg1: i32) -> (i32, i32, i32) {
    %c0_i32 = arith.constant 0 : i32
    %c0_i32_0 = arith.constant 0 : i32
    return %arg0, %arg1, %c0_i32 : i32, i32, i32
  }
}

</mosaic_0001>

<bundles_post_ra>
// kernel: tpu_custom_call.1
= control target key start
LH: loop header
LB: loop body
LE: loop exit
PB: predicated region body
PF: predicated region fallthrough
CT: control target
= control target key end

     0   :  { %6 = vsyncpa [#allocation4], 0  ;;  %s1537_s0 = inlined_call_operand.hbm [shape: f32[2,4,256], index: 0, kind: input, shape index: {}]   ;;  %s1538_s1 = inlined_call_operand.hbm [shape: f32[2,8,128], index: 1, kind: output, shape index: {}]  }
   0x1   :  { %8 = vsyncpa [#allocation4 + $0x1], 0 }
   0x2   :  { %9 = vsyncpa [#allocation5], 0 }
   0x3   :  { %11 = vsyncpa [#allocation5 + $0x1], 0  ;;  %s1269_s6 = smov 0   ;;  %s1271_s7 = smov 0  }
   0x4   :  { %s1273_s8 = smov 0   ;;  %s1275_s9 = smov 0  }
   0x5   :  { %s1277_s10 = smov 0   ;;  %s1279_s11 = smov 0  }
   0x6 LB: > { %s1032_s12 = sadd.s32 4294967295, %s1239_s11   ;;  %s1033_s13 = sadd.s32 4294967294, %s1239_s11   ;;  %s1239_s11 = sphi %s1279_s11, %s17_s11   ;;  %s1235_s10 = sphi %s1277_s10, %s1554_s10   ;;  %s1231_s9 = sphi %s1275_s9, %s1553_s9   ;;  %s1227_s8 = sphi %s1273_s8, %s1552_s8   ;;  %s1223_s7 = sphi %s1271_s7, %s1551_s7   ;;  %s1219_s6 = sphi %s1269_s6, %s1550_s6  }
   0x7   : > { %s29_s14 = sadd.s32 1, %s1235_s10  ;;  %s38_s15 = sadd.s32 1, %s1227_s8 }
   0x8   : > { %p31_p0 = scmp.ge.s32.totalorder %s29_s14, 2  ;;  %p45_p1 = scmp.ne.s32.totalorder %s1227_s8, %s1223_s7 }
   0x9   : > { %p46_p2 = scmp.eq.s32.totalorder %s1239_s11, 0  ;;  %p51_p3 = scmp.ne.s32.totalorder %s1223_s7, %s1219_s6 }
   0xa   : > { %s1556_s14 = smov (%p31_p0, %s29_s14), 0  ;;  %p52_p5 = scmp.eq.s32.totalorder %s1032_s12, 0 }
   0xb   : > { %p1310_p4 = por %p46_p2, %p45_p1  ;;  %s33_s17 = ssub.s32 %s1235_s10, %s1556_s14 }
   0xc   : > { %p77_p6 = scmp.eq.s32.totalorder %s1032_s12, 1  ;;  %p36_p7 = scmp.eq.s32.totalorder %s33_s17, 0 }
   0xd   : > { %p1316_p8 = por %p52_p5, %p51_p3  ;;  %p83_p10 = scmp.eq.s32.totalorder %s1033_s13, 1 }
   0xe   : > { %p1320_p9 = por %p77_p6, %p45_p1  ;;  %p1059_p13 = scmp.lt.s32.totalorder %s1239_s11, 2 }
   0xf   : > { %s1325_s20 = scalar_select %p36_p7, %s1227_s8, %s38_s15  }
  0x10   : > { %s1542_s19 = scalar_select %p1320_p9, 1, 0 }
  0x11   : > { %p1327_p11 = por %p83_p10, %p51_p3  ;;  %s103_s22 = sand.u32 1, %s1227_s8  }
  0x12   : > { %s1036_s23 = sshll.u32 %s103_s22, 3  ;;  %s1046_s24 = sshll.u32 %s1235_s10, 7 }
  0x13   : > { %s1543_s21 = scalar_select %p1327_p11, 1, 0 }
  0x14   : > { %s1338_s27 = scalar_lea.hbm %s1537_s0, %s1046_s24  ;;  %s107_s28 = scalar_lea.vmem [#allocation3], %s1036_s23 }
  0x15   : > { %s117_s29 = sshll.u32 %s107_s28, 4  ;;  %p1344_p0 = pnand %p1059_p13, %p1310_p4  ;;  %s1340_s29 = int_to_ptr.vmem [resolvable:$true] %s117_s29 }
  0x16   : > { %s104_s2 = scalar_lea.sflag [#allocation4], %s103_s22  ;;  %s1127_s3 = scalar_lea.hbm %s1338_s27, 128 }
  0x17   : > { %p1128_p3 = scmp.ne.s32.totalorder %s1338_s27, %s1127_s3  ;;  %p1129_p5 = pneg %p1344_p0 }
  0x18   : > { %s1132_s12 = scalar_lea.hbm %s1537_s0, 256  ;;  %p1133_p4 = scmp.lt.u32.totalorder %s1338_s27, %s1537_s0 }
  0x19   : > { %p1130_p6 = pnand %p1129_p5, %p1128_p3  ;;  %p1134_p10 = scmp.lt.u32.totalorder %s1132_s12, %s1127_s3 }
  0x1a   : > { %p1136_p12 = scmp.lt.u32.totalorder %s1127_s3, %s1338_s27 }
  0x1b   : > { %p1131_p7 = pneg %p1130_p6  ;;  %p1135_p13 = por %p1134_p10, %p1133_p4 }
  0x1d   : > { %p1137_p1 = por %p1136_p12, %p1135_p13 }
  0x1f   : > { %p1138_p2 = pnand %p1137_p1, %p1131_p7 }
  0x21   : > { %1141 = shalt.err (!%p1138_p2)
}
  0x22   : > { %s1142_s16 = scalar_lea.vmem %s1340_s29, 128  ;;  %s1241_s17 = smov [#allocation3]  }
  0x23   : > { %p1143_p3 = scmp.ne.s32.totalorder %s1340_s29, %s1142_s16  ;;  %s1147_s22 = sshll.u32 %s1241_s17, 4  ;;  %s1148_s22 = int_to_ptr.vmem [resolvable:$false] %s1147_s22 }
  0x24   : > { %s1149_s23 = scalar_lea.vmem %s1148_s22, 256  ;;  %p1150_p9 = scmp.lt.s32.totalorder %s1340_s29, %s1148_s22 }
  0x25   : > { %p1145_p6 = pnand %p1143_p3, %p1129_p5  ;;  %p1151_p4 = scmp.lt.s32.totalorder %s1149_s23, %s1142_s16 }
  0x27   : > { %p1146_p11 = pneg %p1145_p6  ;;  %p1152_p10 = por %p1151_p4, %p1150_p9 }
  0x29   : > { %p1153_p12 = pnand %p1152_p10, %p1146_p11 }
  0x2b   : > { %1156 = shalt.err (!%p1153_p12)
}
  0x2c   : > { %1054 = dma.hbm_to_vmem [thread:$0]  (!%p1344_p0), %s1338_s27, 128, %s1340_s29, %s104_s2  }
  0x2d   : > { %p1545_p1 = scmp.lt.s32.totalorder %s1239_s11, 3  ;;  %p1546_p2 = scmp.ge.s32.totalorder %s1239_s11, 1 }
  0x2f   : > { %p123_p5 = pnand %p1546_p2, %p1545_p1 }
  0x30   : > { %s1380_s24 = sand.u32 (!%p123_p5), 1, %s1223_s7  }
  0x31   : > { %126 = sbr.rel (%p123_p5) target bundleno = 615 (0x267), region = 24  ;;  %s1040_s25 = sshll.u32 (!%p123_p5), %s1380_s24, 3 }
  0x32   : > { %s129_s26 = scalar_lea.sflag (!%p123_p5), [#allocation4], %s1380_s24  ;;  %s132_s28 = scalar_lea.vmem (!%p123_p5), [#allocation3], %s1040_s25 }
  0x38   : > { %1210 = dma.done.wait (%p1316_p8), %s129_s26, 128  }
  0x39   : > { %1212 = vsyncadd (%p1316_p8), %s129_s26, 4294967168  ;;  %v152_v0 = vld [vmem:[%s132_s28] sm:$0xff]  ;;  %vm220_vm0 = vcmask 31744   ;;  %s1242_s18 = smov 4   ;;  %s1243_s27 = smov 16   ;;  %vm825_vm1 = vcmask 64512  }
  0x3a   : > { %156 = vxpose.xlu0.b32.start.end [1/1] (short) %v152_v0, 128  ;;  %v154_v1 = vcombine.high %v152_v0, %v152_v0  ;;  %s1244_s29 = smov 12   ;;  %s1245_s30 = smov 20   ;;  %vm827_vm2 = vcmask 97280   ;;  %vm829_vm3 = vcmask 130048   ;;  %vm831_vm4 = vcmask 162816  }
  0x3b   : > { %s1246_s2 = smov 32   ;;  %s1247_s3 = smov 36   ;;  %vm833_vm5 = vcmask 195584   ;;  %vm835_vm6 = vcmask 228352   ;;  %vm837_vm7 = vcmask 261120   ;;  %vm839_vm8 = vcmask 293888  }
  0x3c   : > { %s1248_s4 = smov 48   ;;  %s1249_s5 = smov 52   ;;  %vm841_vm9 = vcmask 326656   ;;  %vm843_vm10 = vcmask 359424   ;;  %vm845_vm11 = vcmask 392192   ;;  %vm847_vm12 = vcmask 424960  }
  0x3d   : > { %s1250_s12 = smov 8   ;;  %s1251_s13 = smov 24   ;;  %vm849_vm13 = vcmask 457728   ;;  %vm851_vm14 = vcmask 490496   ;;  %vm932_vm15 = vcmask 523264  }
  0x3e   : > { %s1252_s15 = smov 28   ;;  %s1253_s16 = smov 40  }
  0x3f   : > { %s1254_s17 = smov 44   ;;  %s1255_s22 = smov 56  }
  0x40   : > { %s1256_s23 = smov 60   ;;  %s1257_s26 = smov 64  }
  0x41   : > { %s1043_s28 = sshll.u32 %s1231_s9, 7  ;;  %p1547_p9 = scmp.ne.s32.totalorder %s1542_s19, 0 }
  0x42   : > { %s1258_s9 = smov [#allocation6]  }
  0x77   : > { %188 = vxpose.xlu0.b32.start.end [1/1] (short) %v154_v1, 128 }
  0xba   : > { %v172_v2 = vpop.trf.xlu0 }
  0xbb   : > { %221 = vst.msk [vmem:[#allocation2] sm:$0xff] %vm220_vm0, %v172_v2 }
  0xbe   : > { %v173_v3 = vpop.trf.xlu0 }
  0xbf   : > { %222 = vst.msk [vmem:[#allocation2 + $0x8] sm:$0xff] %vm220_vm0, %v173_v3 }
  0xc2   : > { %v174_v4 = vpop.trf.xlu0 }
  0xc3   : > { %223 = vst.msk [vmem:[#allocation2 + $0x10] sm:$0xff] %vm220_vm0, %v174_v4 }
  0xc6   : > { %v175_v5 = vpop.trf.xlu0  ;;  %v525_v32 = vld [vmem:[#allocation2 + $0x9] ss:$32 sm:$0x1]  ;;  %v573_v37 = vld [vmem:[#allocation2 + $0xa] ss:$32 sm:$0x1] }
  0xc7   : > { %224 = vst.msk [vmem:[#allocation2 + $0x18] sm:$0xff] %vm220_vm0, %v175_v5  ;;  %v589_v52 = vld [vmem:[#allocation2 + $0xb] ss:$32 sm:$0x1] }
  0xc8   : > { %v637_v2 = vld [vmem:[#allocation2 + $0xc] ss:$32 sm:$0x1] }
  0xca   : > { %v176_v6 = vpop.trf.xlu0  ;;  %v301_v41 = vld [vmem:[#allocation2 + $0x11] ss:$32 sm:$0x1] }
  0xcb   : > { %225 = vst.msk [vmem:[#allocation2 + $0x20] sm:$0xff] %vm220_vm0, %v176_v6 }
  0xce   : > { %v177_v7 = vpop.trf.xlu0 }
  0xcf   : > { %226 = vst.msk [vmem:[#allocation2 + $0x28] sm:$0xff] %vm220_vm0, %v177_v7 }
  0xd2   : > { %v178_v8 = vpop.trf.xlu0 }
  0xd3   : > { %227 = vst.msk [vmem:[#allocation2 + $0x30] sm:$0xff] %vm220_vm0, %v178_v8 }
  0xd6   : > { %v179_v9 = vpop.trf.xlu0  ;;  %v526_v30 = vld [vmem:[#allocation2 + $0x9] ss:$32 sm:$0x2]  ;;  %v574_v35 = vld [vmem:[#allocation2 + $0xa] ss:$32 sm:$0x2] }
  0xd7   : > { %228 = vst.msk [vmem:[#allocation2 + $0x38] sm:$0xff] %vm220_vm0, %v179_v9  ;;  %v527_v34 = vor.u32 %v526_v30, %v525_v32  ;;  %v575_v46 = vor.u32 %v574_v35, %v573_v37  ;;  %v590_v49 = vld [vmem:[#allocation2 + $0xb] ss:$32 sm:$0x2] }
  0xd8   : > { %v591_v0 = vor.u32 %v590_v49, %v589_v52  ;;  %v638_v3 = vld [vmem:[#allocation2 + $0xc] ss:$32 sm:$0x2] }
  0xda   : > { %v180_v10 = vpop.trf.xlu0  ;;  %v302_v38 = vld [vmem:[#allocation2 + $0x11] ss:$32 sm:$0x2] }
  0xdb   : > { %229 = vst.msk [vmem:[#allocation2 + $0x40] sm:$0xff] %vm220_vm0, %v180_v10  ;;  %v303_v48 = vor.u32 %v302_v38, %v301_v41 }
  0xde   : > { %v181_v11 = vpop.trf.xlu0 }
  0xdf   : > { %230 = vst.msk [vmem:[#allocation2 + $0x48] sm:$0xff] %vm220_vm0, %v181_v11 }
  0xe2   : > { %v182_v12 = vpop.trf.xlu0 }
  0xe3   : > { %231 = vst.msk [vmem:[#allocation2 + $0x50] sm:$0xff] %vm220_vm0, %v182_v12 }
  0xe6   : > { %v183_v13 = vpop.trf.xlu0  ;;  %v528_v33 = vld [vmem:[#allocation2 + $0x9] ss:$32 sm:$0x4]  ;;  %v576_v40 = vld [vmem:[#allocation2 + $0xa] ss:$32 sm:$0x4] }
  0xe7   : > { %232 = vst.msk [vmem:[#allocation2 + $0x58] sm:$0xff] %vm220_vm0, %v183_v13  ;;  %v529_v39 = vor.u32 %v528_v33, %v527_v34  ;;  %v577_v54 = vor.u32 %v576_v40, %v575_v46  ;;  %v592_v57 = vld [vmem:[#allocation2 + $0xb] ss:$32 sm:$0x4] }
  0xe8   : > { %v640_v6 = vld [vmem:[#allocation2 + $0xc] ss:$32 sm:$0x4]  ;;  %v593_v11 = vor.u32 %v592_v57, %v591_v0  ;;  %v702_v40 = vld [vmem:[#allocation2 + $0xe] ss:$32 sm:$0x2] }
  0xe9   : > { %v701_v46 = vld [vmem:[#allocation2 + $0xe] ss:$32 sm:$0x1] }
  0xea   : > { %v184_v14 = vpop.trf.xlu0  ;;  %v304_v44 = vld [vmem:[#allocation2 + $0x11] ss:$32 sm:$0x4] }
  0xeb   : > { %233 = vst.msk [vmem:[#allocation2 + $0x60] sm:$0xff] %vm220_vm0, %v184_v14  ;;  %v305_v56 = vor.u32 %v304_v44, %v303_v48 }
  0xee   : > { %v185_v15 = vpop.trf.xlu0 }
  0xef   : > { %234 = vst.msk [vmem:[#allocation2 + $0x68] sm:$0xff] %vm220_vm0, %v185_v15 }
  0xf2   : > { %v186_v16 = vpop.trf.xlu0 }
  0xf3   : > { %235 = vst.msk [vmem:[#allocation2 + $0x70] sm:$0xff] %vm220_vm0, %v186_v16  ;;  %v639_v16 = vor.u32 %v638_v3, %v637_v2 }
  0xf6   : > { %v187_v17 = vpop.trf.xlu0  ;;  %v530_v36 = vld [vmem:[#allocation2 + $0x9] ss:$32 sm:$0x8]  ;;  %v578_v47 = vld [vmem:[#allocation2 + $0xa] ss:$32 sm:$0x8] }
  0xf7   : > { %236 = vst.msk [vmem:[#allocation2 + $0x78] sm:$0xff] %vm220_vm0, %v187_v17  ;;  %v531_v45 = vor.u32 %v530_v36, %v529_v39  ;;  %v579_v62 = vor.u32 %v578_v47, %v577_v54  ;;  %v594_v1 = vld [vmem:[#allocation2 + $0xb] ss:$32 sm:$0x8] }
  0xf8   : > { %v658_v39 = vld [vmem:[#allocation2 + $0xd] ss:$32 sm:$0x8]  ;;  %v704_v47 = vld [vmem:[#allocation2 + $0xe] ss:$32 sm:$0x4] }
  0xf9   : > { %v706_v54 = vld [vmem:[#allocation2 + $0xe] ss:$32 sm:$0x8] }
  0xfa   : > { %v204_v18 = vpop.trf.xlu0  ;;  %v306_v51 = vld [vmem:[#allocation2 + $0x11] ss:$32 sm:$0x8] }
  0xfb   : > { %237 = vst.msk [vmem:[#allocation2 + $0x80] sm:$0xff] %vm220_vm0, %v204_v18  ;;  %v307_v63 = vor.u32 %v306_v51, %v305_v56 }
  0xfe   : > { %v205_v19 = vpop.trf.xlu0 }
  0xff   : > { %238 = vst.msk [vmem:[#allocation2 + $0x88] sm:$0xff] %vm220_vm0, %v205_v19 }
 0x102   : > { %v206_v20 = vpop.trf.xlu0 }
 0x103   : > { %239 = vst.msk [vmem:[#allocation2 + $0x90] sm:$0xff] %vm220_vm0, %v206_v20  ;;  %v595_v20 = vor.u32 %v594_v1, %v593_v11 }
 0x106   : > { %v207_v21 = vpop.trf.xlu0  ;;  %v532_v43 = vld [vmem:[#allocation2 + $0x9] ss:$32 sm:$0x10]  ;;  %v580_v55 = vld [vmem:[#allocation2 + $0xa] ss:$32 sm:$0x10] }
 0x107   : > { %240 = vst.msk [vmem:[#allocation2 + $0x98] sm:$0xff] %vm220_vm0, %v207_v21  ;;  %v533_v53 = vor.u32 %v532_v43, %v531_v45  ;;  %v581_v8 = vor.u32 %v580_v55, %v579_v62  ;;  %v596_v12 = vld [vmem:[#allocation2 + $0xb] ss:$32 sm:$0x10] }
 0x108   : > { %v642_v21 = vld [vmem:[#allocation2 + $0xc] ss:$32 sm:$0x8]  ;;  %v660_v49 = vld [vmem:[#allocation2 + $0xd] ss:$32 sm:$0x10] }
 0x109   : > { %v644_v30 = vld [vmem:[#allocation2 + $0xc] ss:$32 sm:$0x10]  ;;  %v718_v55 = vld [vmem:[#allocation2 + $0xf] ss:$32 sm:$0x2] }
 0x10a   : > { %v208_v22 = vpop.trf.xlu0  ;;  %v308_v60 = vld [vmem:[#allocation2 + $0x11] ss:$32 sm:$0x10]  ;;  %v720_v62 = vld [vmem:[#allocation2 + $0xf] ss:$32 sm:$0x4] }
 0x10b   : > { %241 = vst.msk [vmem:[#allocation2 + $0xa0] sm:$0xff] %vm220_vm0, %v208_v22  ;;  %v309_v10 = vor.u32 %v308_v60, %v307_v63  ;;  %v653_v22 = vld [vmem:[#allocation2 + $0xd] ss:$32 sm:$0x1] }
 0x10c   : > { %v708_v0 = vld [vmem:[#allocation2 + $0xe] ss:$32 sm:$0x10] }
 0x10e   : > { %v209_v23 = vpop.trf.xlu0 }
 0x10f   : > { %242 = vst.msk [vmem:[#allocation2 + $0xa8] sm:$0xff] %vm220_vm0, %v209_v23  ;;  %v654_v23 = vld [vmem:[#allocation2 + $0xd] ss:$32 sm:$0x2] }
 0x110   : > { %v655_v34 = vor.u32 %v654_v23, %v653_v22 }
 0x112   : > { %v210_v24 = vpop.trf.xlu0 }
 0x113   : > { %243 = vst.msk [vmem:[#allocation2 + $0xb0] sm:$0xff] %vm220_vm0, %v210_v24 }
 0x116   : > { %v211_v25 = vpop.trf.xlu0  ;;  %v534_v50 = vld [vmem:[#allocation2 + $0x9] ss:$32 sm:$0x20]  ;;  %v582_v4 = vld [vmem:[#allocation2 + $0xa] ss:$32 sm:$0x20] }
 0x117   : > { %244 = vst.msk [vmem:[#allocation2 + $0xb8] sm:$0xff] %vm220_vm0, %v211_v25  ;;  %v535_v61 = vor.u32 %v534_v50, %v533_v53  ;;  %v583_v18 = vor.u32 %v582_v4, %v581_v8  ;;  %v598_v25 = vld [vmem:[#allocation2 + $0xb] ss:$32 sm:$0x20]  ;;  %v703_v53 = vor.u32 %v702_v40, %v701_v46 }
 0x118   : > { %v662_v57 = vld [vmem:[#allocation2 + $0xd] ss:$32 sm:$0x20]  ;;  %v710_v8 = vld [vmem:[#allocation2 + $0xe] ss:$32 sm:$0x20] }
 0x119   : > { %v726_v23 = vld [vmem:[#allocation2 + $0xf] ss:$32 sm:$0x20] }
 0x11a   : > { %v212_v26 = vpop.trf.xlu0  ;;  %v310_v5 = vld [vmem:[#allocation2 + $0x11] ss:$32 sm:$0x20] }
 0x11b   : > { %245 = vst.msk [vmem:[#allocation2 + $0xc0] sm:$0xff] %vm220_vm0, %v212_v26  ;;  %v311_v19 = vor.u32 %v310_v5, %v309_v10  ;;  %v722_v5 = vld [vmem:[#allocation2 + $0xf] ss:$32 sm:$0x8] }
 0x11e   : > { %v213_v27 = vpop.trf.xlu0 }
 0x11f   : > { %246 = vst.msk [vmem:[#allocation2 + $0xc8] sm:$0xff] %vm220_vm0, %v213_v27 }
 0x122   : > { %v214_v28 = vpop.trf.xlu0 }
 0x123   : > { %247 = vst.msk [vmem:[#allocation2 + $0xd0] sm:$0xff] %vm220_vm0, %v214_v28  ;;  %v597_v28 = vor.u32 %v596_v12, %v595_v20  ;;  %v541_v12 = vld [vmem:[#allocation2 + $0x18] ss:$32 sm:$0x1] }
 0x124   : > { %v546_v20 = vld [vmem:[#allocation2 + $0x18] ss:$32 sm:$0x8] }
 0x125   : > { %v599_v37 = vor.u32 %v598_v25, %v597_v28  ;;  %v560_v28 = vld [vmem:[#allocation2 + $0x19] ss:$32 sm:$0x4] }
 0x126   : > { %v215_v29 = vpop.trf.xlu0  ;;  %v536_v59 = vld [vmem:[#allocation2 + $0x9] ss:$32 sm:$0x40]  ;;  %v584_v9 = vld [vmem:[#allocation2 + $0xa] ss:$32 sm:$0x40] }
 0x127   : > { %248 = vst.msk [vmem:[#allocation2 + $0xd8] sm:$0xff] %vm220_vm0, %v215_v29  ;;  %v537_v7 = vor.u32 %v536_v59, %v535_v61  ;;  %v585_v26 = vor.u32 %v584_v9, %v583_v18  ;;  %v641_v29 = vor.u32 %v640_v6, %v639_v16  ;;  %v600_v33 = vld [vmem:[#allocation2 + $0xb] ss:$32 sm:$0x40]  ;;  %v705_v61 = vor.u32 %v704_v47, %v703_v53 }
 0x128   : > { %v601_v43 = vor.u32 %v600_v33, %v599_v37  ;;  %v648_v48 = vld [vmem:[#allocation2 + $0xc] ss:$32 sm:$0x40]  ;;  %v664_v63 = vld [vmem:[#allocation2 + $0xd] ss:$32 sm:$0x40] }
 0x129   : > { %v643_v38 = vor.u32 %v642_v21, %v641_v29  ;;  %v707_v3 = vor.u32 %v706_v54, %v705_v61  ;;  %v542_v6 = vld [vmem:[#allocation2 + $0x18] ss:$32 sm:$0x2]  ;;  %v558_v21 = vld [vmem:[#allocation2 + $0x19] ss:$32 sm:$0x2] }
 0x12a   : > { %v216_v31 = vpop.trf.xlu0  ;;  %v312_v15 = vld [vmem:[#allocation2 + $0x11] ss:$32 sm:$0x40]  ;;  %v728_v29 = vld [vmem:[#allocation2 + $0xf] ss:$32 sm:$0x40] }
 0x12b   : > { %249 = vst.msk [vmem:[#allocation2 + $0xe0] sm:$0xff] %vm220_vm0, %v216_v31  ;;  %v313_v27 = vor.u32 %v312_v15, %v311_v19  ;;  %v656_v31 = vld [vmem:[#allocation2 + $0xd] ss:$32 sm:$0x4]  ;;  %v645_v44 = vor.u32 %v644_v30, %v643_v38  ;;  %v709_v10 = vor.u32 %v708_v0, %v707_v3  ;;  %v543_v19 = vor.u32 %v542_v6, %v541_v12 }
 0x12c   : > { %v657_v45 = vor.u32 %v656_v31, %v655_v34  ;;  %v724_v15 = vld [vmem:[#allocation2 + $0xf] ss:$32 sm:$0x10]  ;;  %v548_v30 = vld [vmem:[#allocation2 + $0x18] ss:$32 sm:$0x10] }
 0x12d   : > { %v550_v38 = vld [vmem:[#allocation2 + $0x18] ss:$32 sm:$0x20]  ;;  %v566_v53 = vld [vmem:[#allocation2 + $0x19] ss:$32 sm:$0x20] }
 0x12e   : > { %v217_v42 = vpop.trf.xlu0  ;;  %v659_v52 = vor.u32 %v658_v39, %v657_v45  ;;  %v564_v45 = vld [vmem:[#allocation2 + $0x19] ss:$32 sm:$0x10]  ;;  %v621_v54 = vld [vmem:[#allocation2 + $0x1b] ss:$32 sm:$0x1] }
 0x12f   : > { %250 = vst.msk [vmem:[#allocation2 + $0xe8] sm:$0xff] %vm220_vm0, %v217_v42  ;;  %v646_v42 = vld [vmem:[#allocation2 + $0xc] ss:$32 sm:$0x20] }
 0x130   : > { %v647_v51 = vor.u32 %v646_v42, %v645_v44  ;;  %v661_v60 = vor.u32 %v660_v49, %v659_v52  ;;  %v605_v42 = vld [vmem:[#allocation2 + $0x1a] ss:$32 sm:$0x1]  ;;  %v552_v44 = vld [vmem:[#allocation2 + $0x18] ss:$32 sm:$0x40] }
 0x132   : > { %v218_v58 = vpop.trf.xlu0  ;;  %v649_v59 = vor.u32 %v648_v48, %v647_v51  ;;  %v663_v2 = vor.u32 %v662_v57, %v661_v60  ;;  %v622_v51 = vld [vmem:[#allocation2 + $0x1b] ss:$32 sm:$0x2]  ;;  %v612_v60 = vld [vmem:[#allocation2 + $0x1a] ss:$32 sm:$0x10] }
 0x133   : > { %251 = vst.msk [vmem:[#allocation2 + $0xf0] sm:$0xff] %vm220_vm0, %v218_v58  ;;  %v717_v58 = vld [vmem:[#allocation2 + $0xf] ss:$32 sm:$0x1]  ;;  %v623_v0 = vor.u32 %v622_v51, %v621_v54 }
 0x134   : > { %v719_v4 = vor.u32 %v718_v55, %v717_v58  ;;  %v665_v9 = vor.u32 %v664_v63, %v663_v2  ;;  %v624_v58 = vld [vmem:[#allocation2 + $0x1b] ss:$32 sm:$0x4]  ;;  %v670_v2 = vld [vmem:[#allocation2 + $0x1c] ss:$32 sm:$0x2] }
 0x135   : > { %v752_v54 = vld [vmem:[#allocation2 + $0x1f] ss:$32 sm:$0x4] }
 0x136   : > { %v219_v13 = vpop.trf.xlu0  ;;  %v538_v14 = vld [vmem:[#allocation2 + $0x9] ss:$32 sm:$0x80]  ;;  %v586_v24 = vld [vmem:[#allocation2 + $0xa] ss:$32 sm:$0x80]  ;;  %v721_v11 = vor.u32 %v720_v62, %v719_v4 }
 0x137   : > { %252 = vst.msk [vmem:[#allocation2 + $0xf8] sm:$0xff] %vm220_vm0, %v219_v13  ;;  %v539_v17 = vor.u32 %v538_v14, %v537_v7  ;;  %v587_v35 = vor.u32 %v586_v24, %v585_v26  ;;  %v602_v41 = vld [vmem:[#allocation2 + $0xb] ss:$32 sm:$0x80] }
 0x138   : > { %v603_v50 = vor.u32 %v602_v41, %v601_v43  ;;  %v650_v56 = vld [vmem:[#allocation2 + $0xc] ss:$32 sm:$0x80]  ;;  %v666_v7 = vld [vmem:[#allocation2 + $0xd] ss:$32 sm:$0x80]  ;;  %v723_v18 = vor.u32 %v722_v5, %v721_v11 }
 0x139   : > { %854 = vrot.lane.b32.xlu1 %v539_v17, %s1242_s18  ;;  %v651_v1 = vor.u32 %v650_v56, %v649_v59  ;;  %v544_v13 = vld [vmem:[#allocation2 + $0x18] ss:$32 sm:$0x4]  ;;  %v712_v14 = vld [vmem:[#allocation2 + $0xe] ss:$32 sm:$0x40]  ;;  %v667_v16 = vor.u32 %v666_v7, %v665_v9  ;;  %v711_v17 = vor.u32 %v710_v8, %v709_v10  ;;  %v625_v7 = vor.u32 %v624_v58, %v623_v0 }
 0x13a   : > { %v314_v32 = vld [vmem:[#allocation2 + $0x11] ss:$32 sm:$0x80]  ;;  %v714_v22 = vld [vmem:[#allocation2 + $0xe] ss:$32 sm:$0x80]  ;;  %v725_v25 = vor.u32 %v724_v15, %v723_v18  ;;  %v545_v26 = vor.u32 %v544_v13, %v543_v19 }
 0x13b   : > { %v315_v36 = vor.u32 %v314_v32, %v313_v27  ;;  %v713_v24 = vor.u32 %v712_v14, %v711_v17  ;;  %v557_v27 = vld [vmem:[#allocation2 + $0x19] ss:$32 sm:$0x1]  ;;  %v730_v37 = vld [vmem:[#allocation2 + $0xf] ss:$32 sm:$0x80] }
 0x13c   : > { %v727_v32 = vor.u32 %v726_v23, %v725_v25  ;;  %v547_v33 = vor.u32 %v546_v20, %v545_v26  ;;  %v559_v34 = vor.u32 %v558_v21, %v557_v27  ;;  %v608_v43 = vld [vmem:[#allocation2 + $0x1a] ss:$32 sm:$0x4]  ;;  %v568_v59 = vld [vmem:[#allocation2 + $0x19] ss:$32 sm:$0x40] }
 0x13d   : > { %866 = vrot.lane.b32.xlu1 %v587_v35, %s1243_s27  ;;  %773 = vrot.lane.b32.xlu0 %v315_v36, %s1244_s29  ;;  %v715_v31 = vor.u32 %v714_v22, %v713_v24  ;;  %v562_v35 = vld [vmem:[#allocation2 + $0x19] ss:$32 sm:$0x8]  ;;  %v606_v36 = vld [vmem:[#allocation2 + $0x1a] ss:$32 sm:$0x2] }
 0x13e   : > { %v729_v39 = vor.u32 %v728_v29, %v727_v32  ;;  %v549_v40 = vor.u32 %v548_v30, %v547_v33  ;;  %v561_v41 = vor.u32 %v560_v28, %v559_v34  ;;  %v607_v49 = vor.u32 %v606_v36, %v605_v42  ;;  %v554_v52 = vld [vmem:[#allocation2 + $0x18] ss:$32 sm:$0x80]  ;;  %v570_v3 = vld [vmem:[#allocation2 + $0x19] ss:$32 sm:$0x80] }
 0x13f   : > { %v614_v4 = vld [vmem:[#allocation2 + $0x1a] ss:$32 sm:$0x20]  ;;  %v669_v8 = vld [vmem:[#allocation2 + $0x1c] ss:$32 sm:$0x1] }
 0x140   : > { %v731_v46 = vor.u32 %v730_v37, %v729_v39  ;;  %v551_v47 = vor.u32 %v550_v38, %v549_v40  ;;  %v563_v48 = vor.u32 %v562_v35, %v561_v41  ;;  %v609_v57 = vor.u32 %v608_v43, %v607_v49  ;;  %v672_v9 = vld [vmem:[#allocation2 + $0x1c] ss:$32 sm:$0x4]  ;;  %v616_v10 = vld [vmem:[#allocation2 + $0x1a] ss:$32 sm:$0x40] }
 0x141   : > { %870 = vrot.lane.b32.xlu1 %v603_v50, %s1245_s30  ;;  %v610_v50 = vld [vmem:[#allocation2 + $0x1a] ss:$32 sm:$0x8]  ;;  %v628_v11 = vld [vmem:[#allocation2 + $0x1b] ss:$32 sm:$0x10]  ;;  %v671_v15 = vor.u32 %v670_v2, %v669_v8 }
 0x142   : > { %v553_v55 = vor.u32 %v552_v44, %v551_v47  ;;  %v565_v56 = vor.u32 %v564_v45, %v563_v48  ;;  %v611_v63 = vor.u32 %v610_v50, %v609_v57  ;;  %v686_v17 = vld [vmem:[#allocation2 + $0x1d] ss:$32 sm:$0x2]  ;;  %v618_v18 = vld [vmem:[#allocation2 + $0x1a] ss:$32 sm:$0x80] }
 0x143   : > { %v630_v19 = vld [vmem:[#allocation2 + $0x1b] ss:$32 sm:$0x20]  ;;  %v685_v20 = vld [vmem:[#allocation2 + $0x1d] ss:$32 sm:$0x1]  ;;  %v673_v23 = vor.u32 %v672_v9, %v671_v15 }
 0x144   : > { %v555_v61 = vor.u32 %v554_v52, %v553_v55  ;;  %v567_v62 = vor.u32 %v566_v53, %v565_v56  ;;  %v613_v6 = vor.u32 %v612_v60, %v611_v63  ;;  %v688_v24 = vld [vmem:[#allocation2 + $0x1d] ss:$32 sm:$0x4]  ;;  %v632_v25 = vld [vmem:[#allocation2 + $0x1b] ss:$32 sm:$0x40]  ;;  %v687_v30 = vor.u32 %v686_v17, %v685_v20 }
 0x145   : > { %882 = vrot.lane.b32.xlu1 %v651_v1, %s1246_s2  ;;  %v626_v1 = vld [vmem:[#allocation2 + $0x1b] ss:$32 sm:$0x8]  ;;  %v676_v26 = vld [vmem:[#allocation2 + $0x1c] ss:$32 sm:$0x10] }
 0x146   : > { %v569_v5 = vor.u32 %v568_v59, %v567_v62  ;;  %v615_v13 = vor.u32 %v614_v4, %v613_v6  ;;  %v627_v14 = vor.u32 %v626_v1, %v625_v7  ;;  %v734_v32 = vld [vmem:[#allocation2 + $0x1e] ss:$32 sm:$0x2]  ;;  %v634_v33 = vld [vmem:[#allocation2 + $0x1b] ss:$32 sm:$0x80]  ;;  %v689_v38 = vor.u32 %v688_v24, %v687_v30 }
 0x147   : > { %v678_v34 = vld [vmem:[#allocation2 + $0x1c] ss:$32 sm:$0x20]  ;;  %v733_v35 = vld [vmem:[#allocation2 + $0x1e] ss:$32 sm:$0x1] }
 0x148   : > { %v571_v12 = vor.u32 %v570_v3, %v569_v5  ;;  %v617_v21 = vor.u32 %v616_v10, %v615_v13  ;;  %v629_v22 = vor.u32 %v628_v11, %v627_v14  ;;  %v736_v39 = vld [vmem:[#allocation2 + $0x1e] ss:$32 sm:$0x4]  ;;  %v680_v40 = vld [vmem:[#allocation2 + $0x1c] ss:$32 sm:$0x40]  ;;  %v735_v45 = vor.u32 %v734_v32, %v733_v35 }
 0x149   : > { %886 = vrot.lane.b32.xlu1 %v667_v16, %s1247_s3  ;;  %v674_v16 = vld [vmem:[#allocation2 + $0x1c] ss:$32 sm:$0x8]  ;;  %v692_v41 = vld [vmem:[#allocation2 + $0x1d] ss:$32 sm:$0x10] }
 0x14a   : > { %v619_v27 = vor.u32 %v618_v18, %v617_v21  ;;  %v631_v28 = vor.u32 %v630_v19, %v629_v22  ;;  %v675_v29 = vor.u32 %v674_v16, %v673_v23  ;;  %v750_v47 = vld [vmem:[#allocation2 + $0x1f] ss:$32 sm:$0x2]  ;;  %v682_v48 = vld [vmem:[#allocation2 + $0x1c] ss:$32 sm:$0x80]  ;;  %v737_v53 = vor.u32 %v736_v39, %v735_v45 }
 0x14b   : > { %v694_v49 = vld [vmem:[#allocation2 + $0x1d] ss:$32 sm:$0x20]  ;;  %v749_v50 = vld [vmem:[#allocation2 + $0x1f] ss:$32 sm:$0x1] }
 0x14c   : > { %v633_v36 = vor.u32 %v632_v25, %v631_v28  ;;  %v677_v37 = vor.u32 %v676_v26, %v675_v29  ;;  %v696_v55 = vld [vmem:[#allocation2 + $0x1d] ss:$32 sm:$0x40]  ;;  %v740_v56 = vld [vmem:[#allocation2 + $0x1e] ss:$32 sm:$0x10]  ;;  %v751_v60 = vor.u32 %v750_v47, %v749_v50 }
 0x14d   : > { %898 = vrot.lane.b32.xlu1 %v715_v31, %s1248_s4  ;;  %v690_v31 = vld [vmem:[#allocation2 + $0x1d] ss:$32 sm:$0x8]  ;;  %v270_v62 = vld [vmem:[#allocation2 + $0x1] ss:$32 sm:$0x2] }
 0x14e   : > { %v635_v42 = vor.u32 %v634_v33, %v633_v36  ;;  %v679_v43 = vor.u32 %v678_v34, %v677_v37  ;;  %v691_v44 = vor.u32 %v690_v31, %v689_v38  ;;  %v698_v63 = vld [vmem:[#allocation2 + $0x1d] ss:$32 sm:$0x80]  ;;  %v742_v0 = vld [vmem:[#allocation2 + $0x1e] ss:$32 sm:$0x20]  ;;  %v753_v4 = vor.u32 %v752_v54, %v751_v60 }
 0x14f   : > { %v269_v1 = vld [vmem:[#allocation2 + $0x1] ss:$32 sm:$0x1]  ;;  %v744_v6 = vld [vmem:[#allocation2 + $0x1e] ss:$32 sm:$0x40] }
 0x150   : > { %v681_v51 = vor.u32 %v680_v40, %v679_v43  ;;  %v693_v52 = vor.u32 %v692_v41, %v691_v44  ;;  %v272_v5 = vld [vmem:[#allocation2 + $0x1] ss:$32 sm:$0x4]  ;;  %v756_v7 = vld [vmem:[#allocation2 + $0x1f] ss:$32 sm:$0x10]  ;;  %v271_v11 = vor.u32 %v270_v62, %v269_v1 }
 0x151   : > { %902 = vrot.lane.b32.xlu1 %v731_v46, %s1249_s5  ;;  %v738_v46 = vld [vmem:[#allocation2 + $0x1e] ss:$32 sm:$0x8]  ;;  %v286_v13 = vld [vmem:[#allocation2 + $0x10] ss:$32 sm:$0x2] }
 0x152   : > { %v683_v57 = vor.u32 %v682_v48, %v681_v51  ;;  %v695_v58 = vor.u32 %v694_v49, %v693_v52  ;;  %v739_v59 = vor.u32 %v738_v46, %v737_v53  ;;  %v746_v14 = vld [vmem:[#allocation2 + $0x1e] ss:$32 sm:$0x80]  ;;  %v758_v15 = vld [vmem:[#allocation2 + $0x1f] ss:$32 sm:$0x20]  ;;  %v273_v19 = vor.u32 %v272_v5, %v271_v11 }
 0x153   : > { %v285_v16 = vld [vmem:[#allocation2 + $0x10] ss:$32 sm:$0x1]  ;;  %v760_v21 = vld [vmem:[#allocation2 + $0x1f] ss:$32 sm:$0x40] }
 0x154   : > { %v697_v2 = vor.u32 %v696_v55, %v695_v58  ;;  %v741_v3 = vor.u32 %v740_v56, %v739_v59  ;;  %v288_v20 = vld [vmem:[#allocation2 + $0x10] ss:$32 sm:$0x4]  ;;  %v276_v22 = vld [vmem:[#allocation2 + $0x1] ss:$32 sm:$0x10]  ;;  %v287_v26 = vor.u32 %v286_v13, %v285_v16 }
 0x155   : > { %858 = vrot.lane.b32.xlu1 %v555_v61, %s1250_s12  ;;  %v754_v61 = vld [vmem:[#allocation2 + $0x1f] ss:$32 sm:$0x8]  ;;  %v318_v28 = vld [vmem:[#allocation2 + $0x2] ss:$32 sm:$0x2] }
 0x156   : > { %v699_v8 = vor.u32 %v698_v63, %v697_v2  ;;  %v743_v9 = vor.u32 %v742_v0, %v741_v3  ;;  %v755_v10 = vor.u32 %v754_v61, %v753_v4  ;;  %v762_v29 = vld [vmem:[#allocation2 + $0x1f] ss:$32 sm:$0x80]  ;;  %v278_v30 = vld [vmem:[#allocation2 + $0x1] ss:$32 sm:$0x20]  ;;  %v289_v34 = vor.u32 %v288_v20, %v287_v26 }
 0x157   : > { %v317_v31 = vld [vmem:[#allocation2 + $0x2] ss:$32 sm:$0x1]  ;;  %v280_v36 = vld [vmem:[#allocation2 + $0x1] ss:$32 sm:$0x40] }
 0x158   : > { %v745_v17 = vor.u32 %v744_v6, %v743_v9  ;;  %v757_v18 = vor.u32 %v756_v7, %v755_v10  ;;  %v320_v35 = vld [vmem:[#allocation2 + $0x2] ss:$32 sm:$0x4]  ;;  %v292_v37 = vld [vmem:[#allocation2 + $0x10] ss:$32 sm:$0x10]  ;;  %v319_v41 = vor.u32 %v318_v28, %v317_v31 }
 0x159   : > { %862 = vrot.lane.b32.xlu1 %v571_v12, %s1244_s29  ;;  %v274_v12 = vld [vmem:[#allocation2 + $0x1] ss:$32 sm:$0x8]  ;;  %v334_v43 = vld [vmem:[#allocation2 + $0x3] ss:$32 sm:$0x2] }
 0x15a   : > { %v747_v23 = vor.u32 %v746_v14, %v745_v17  ;;  %v759_v24 = vor.u32 %v758_v15, %v757_v18  ;;  %v275_v25 = vor.u32 %v274_v12, %v273_v19  ;;  %v282_v44 = vld [vmem:[#allocation2 + $0x1] ss:$32 sm:$0x80]  ;;  %v294_v45 = vld [vmem:[#allocation2 + $0x10] ss:$32 sm:$0x20]  ;;  %v321_v48 = vor.u32 %v320_v35, %v319_v41 }
 0x15b   : > { %v333_v49 = vld [vmem:[#allocation2 + $0x3] ss:$32 sm:$0x1]  ;;  %v296_v51 = vld [vmem:[#allocation2 + $0x10] ss:$32 sm:$0x40] }
 0x15c   : > { %v761_v32 = vor.u32 %v760_v21, %v759_v24  ;;  %v277_v33 = vor.u32 %v276_v22, %v275_v25  ;;  %v336_v50 = vld [vmem:[#allocation2 + $0x3] ss:$32 sm:$0x4]  ;;  %v324_v52 = vld [vmem:[#allocation2 + $0x2] ss:$32 sm:$0x10]  ;;  %v335_v56 = vor.u32 %v334_v43, %v333_v49 }
 0x15d   : > { %874 = vrot.lane.b32.xlu1 %v619_v27, %s1251_s13  ;;  %v290_v27 = vld [vmem:[#allocation2 + $0x10] ss:$32 sm:$0x8]  ;;  %v350_v58 = vld [vmem:[#allocation2 + $0x12] ss:$32 sm:$0x2] }
 0x15e   : > { %v763_v38 = vor.u32 %v762_v29, %v761_v32  ;;  %v279_v39 = vor.u32 %v278_v30, %v277_v33  ;;  %v291_v40 = vor.u32 %v290_v27, %v289_v34  ;;  %v298_v59 = vld [vmem:[#allocation2 + $0x10] ss:$32 sm:$0x80]  ;;  %v326_v60 = vld [vmem:[#allocation2 + $0x2] ss:$32 sm:$0x20]  ;;  %v337_v63 = vor.u32 %v336_v50, %v335_v56 }
 0x15f   : > { %v349_v0 = vld [vmem:[#allocation2 + $0x12] ss:$32 sm:$0x1]  ;;  %v328_v2 = vld [vmem:[#allocation2 + $0x2] ss:$32 sm:$0x40] }
 0x160   : > { %v281_v46 = vor.u32 %v280_v36, %v279_v39  ;;  %v293_v47 = vor.u32 %v292_v37, %v291_v40  ;;  %v352_v1 = vld [vmem:[#allocation2 + $0x12] ss:$32 sm:$0x4]  ;;  %v340_v3 = vld [vmem:[#allocation2 + $0x3] ss:$32 sm:$0x10]  ;;  %v351_v7 = vor.u32 %v350_v58, %v349_v0 }
 0x161   : > { %878 = vrot.lane.b32.xlu1 %v635_v42, %s1252_s15  ;;  %v322_v42 = vld [vmem:[#allocation2 + $0x2] ss:$32 sm:$0x8]  ;;  %v366_v9 = vld [vmem:[#allocation2 + $0x13] ss:$32 sm:$0x2] }
 0x162   : > { %v283_v53 = vor.u32 %v282_v44, %v281_v46  ;;  %v295_v54 = vor.u32 %v294_v45, %v293_v47  ;;  %v323_v55 = vor.u32 %v322_v42, %v321_v48  ;;  %v330_v10 = vld [vmem:[#allocation2 + $0x2] ss:$32 sm:$0x80]  ;;  %v342_v11 = vld [vmem:[#allocation2 + $0x3] ss:$32 sm:$0x20]  ;;  %v353_v14 = vor.u32 %v352_v1, %v351_v7 }
 0x163   : > { %v365_v15 = vld [vmem:[#allocation2 + $0x13] ss:$32 sm:$0x1]  ;;  %v344_v17 = vld [vmem:[#allocation2 + $0x3] ss:$32 sm:$0x40] }
 0x164   : > { %v297_v61 = vor.u32 %v296_v51, %v295_v54  ;;  %v325_v62 = vor.u32 %v324_v52, %v323_v55  ;;  %v368_v16 = vld [vmem:[#allocation2 + $0x13] ss:$32 sm:$0x4]  ;;  %v356_v18 = vld [vmem:[#allocation2 + $0x12] ss:$32 sm:$0x10]  ;;  %v367_v22 = vor.u32 %v366_v9, %v365_v15 }
 0x165   : > { %890 = vrot.lane.b32.xlu1 %v683_v57, %s1253_s16  ;;  %v338_v57 = vld [vmem:[#allocation2 + $0x3] ss:$32 sm:$0x8]  ;;  %v382_v24 = vld [vmem:[#allocation2 + $0x4] ss:$32 sm:$0x2] }
 0x166   : > { %v299_v4 = vor.u32 %v298_v59, %v297_v61  ;;  %v327_v5 = vor.u32 %v326_v60, %v325_v62  ;;  %v339_v6 = vor.u32 %v338_v57, %v337_v63  ;;  %v346_v25 = vld [vmem:[#allocation2 + $0x3] ss:$32 sm:$0x80]  ;;  %v358_v26 = vld [vmem:[#allocation2 + $0x12] ss:$32 sm:$0x20]  ;;  %v369_v29 = vor.u32 %v368_v16, %v367_v22 }
 0x167   : > { %v381_v30 = vld [vmem:[#allocation2 + $0x4] ss:$32 sm:$0x1]  ;;  %v360_v32 = vld [vmem:[#allocation2 + $0x12] ss:$32 sm:$0x40] }
 0x168   : > { %v329_v12 = vor.u32 %v328_v2, %v327_v5  ;;  %v341_v13 = vor.u32 %v340_v3, %v339_v6  ;;  %v384_v31 = vld [vmem:[#allocation2 + $0x4] ss:$32 sm:$0x4]  ;;  %v372_v33 = vld [vmem:[#allocation2 + $0x13] ss:$32 sm:$0x10]  ;;  %v383_v37 = vor.u32 %v382_v24, %v381_v30 }
 0x169   : > { %894 = vrot.lane.b32.xlu1 %v699_v8, %s1254_s17  ;;  %v354_v8 = vld [vmem:[#allocation2 + $0x12] ss:$32 sm:$0x8]  ;;  %v398_v39 = vld [vmem:[#allocation2 + $0x5] ss:$32 sm:$0x2] }
 0x16a   : > { %v331_v19 = vor.u32 %v330_v10, %v329_v12  ;;  %v343_v20 = vor.u32 %v342_v11, %v341_v13  ;;  %v355_v21 = vor.u32 %v354_v8, %v353_v14  ;;  %v362_v40 = vld [vmem:[#allocation2 + $0x12] ss:$32 sm:$0x80]  ;;  %v374_v41 = vld [vmem:[#allocation2 + $0x13] ss:$32 sm:$0x20]  ;;  %v385_v44 = vor.u32 %v384_v31, %v383_v37 }
 0x16b   : > { %v397_v45 = vld [vmem:[#allocation2 + $0x5] ss:$32 sm:$0x1]  ;;  %v376_v47 = vld [vmem:[#allocation2 + $0x13] ss:$32 sm:$0x40] }
 0x16c   : > { %v345_v27 = vor.u32 %v344_v17, %v343_v20  ;;  %v357_v28 = vor.u32 %v356_v18, %v355_v21  ;;  %v400_v46 = vld [vmem:[#allocation2 + $0x5] ss:$32 sm:$0x4]  ;;  %v388_v48 = vld [vmem:[#allocation2 + $0x4] ss:$32 sm:$0x10]  ;;  %v399_v52 = vor.u32 %v398_v39, %v397_v45 }
 0x16d   : > { %906 = vrot.lane.b32.xlu1 %v747_v23, %s1255_s22  ;;  %v370_v23 = vld [vmem:[#allocation2 + $0x13] ss:$32 sm:$0x8]  ;;  %v414_v54 = vld [vmem:[#allocation2 + $0x14] ss:$32 sm:$0x2] }
 0x16e   : > { %v347_v34 = vor.u32 %v346_v25, %v345_v27  ;;  %v359_v35 = vor.u32 %v358_v26, %v357_v28  ;;  %v371_v36 = vor.u32 %v370_v23, %v369_v29  ;;  %v378_v55 = vld [vmem:[#allocation2 + $0x13] ss:$32 sm:$0x80]  ;;  %v390_v56 = vld [vmem:[#allocation2 + $0x4] ss:$32 sm:$0x20]  ;;  %v401_v59 = vor.u32 %v400_v46, %v399_v52 }
 0x16f   : > { %v413_v60 = vld [vmem:[#allocation2 + $0x14] ss:$32 sm:$0x1]  ;;  %v392_v62 = vld [vmem:[#allocation2 + $0x4] ss:$32 sm:$0x40] }
 0x170   : > { %v361_v42 = vor.u32 %v360_v32, %v359_v35  ;;  %v373_v43 = vor.u32 %v372_v33, %v371_v36  ;;  %v416_v61 = vld [vmem:[#allocation2 + $0x14] ss:$32 sm:$0x4]  ;;  %v404_v63 = vld [vmem:[#allocation2 + $0x5] ss:$32 sm:$0x10]  ;;  %v415_v3 = vor.u32 %v414_v54, %v413_v60 }
 0x171   : > { %910 = vrot.lane.b32.xlu1 %v763_v38, %s1256_s23  ;;  %v386_v38 = vld [vmem:[#allocation2 + $0x4] ss:$32 sm:$0x8]  ;;  %v430_v5 = vld [vmem:[#allocation2 + $0x15] ss:$32 sm:$0x2] }
 0x172   : > { %v363_v49 = vor.u32 %v362_v40, %v361_v42  ;;  %v375_v50 = vor.u32 %v374_v41, %v373_v43  ;;  %v387_v51 = vor.u32 %v386_v38, %v385_v44  ;;  %v394_v6 = vld [vmem:[#allocation2 + $0x4] ss:$32 sm:$0x80]  ;;  %v406_v7 = vld [vmem:[#allocation2 + $0x5] ss:$32 sm:$0x20]  ;;  %v417_v10 = vor.u32 %v416_v61, %v415_v3 }
 0x173   : > { %v429_v11 = vld [vmem:[#allocation2 + $0x15] ss:$32 sm:$0x1]  ;;  %v408_v13 = vld [vmem:[#allocation2 + $0x5] ss:$32 sm:$0x40] }
 0x174   : > { %v377_v57 = vor.u32 %v376_v47, %v375_v50  ;;  %v389_v58 = vor.u32 %v388_v48, %v387_v51  ;;  %v432_v12 = vld [vmem:[#allocation2 + $0x15] ss:$32 sm:$0x4]  ;;  %v420_v14 = vld [vmem:[#allocation2 + $0x14] ss:$32 sm:$0x10]  ;;  %v431_v18 = vor.u32 %v430_v5, %v429_v11 }
 0x175   : > { %765 = vrot.lane.b32.xlu1 %v283_v53, %s1242_s18  ;;  %v402_v53 = vld [vmem:[#allocation2 + $0x5] ss:$32 sm:$0x8]  ;;  %v446_v20 = vld [vmem:[#allocation2 + $0x6] ss:$32 sm:$0x2] }
 0x176   : > { %v379_v0 = vor.u32 %v378_v55, %v377_v57  ;;  %v391_v1 = vor.u32 %v390_v56, %v389_v58  ;;  %v403_v2 = vor.u32 %v402_v53, %v401_v59  ;;  %v410_v21 = vld [vmem:[#allocation2 + $0x5] ss:$32 sm:$0x80]  ;;  %v422_v22 = vld [vmem:[#allocation2 + $0x14] ss:$32 sm:$0x20]  ;;  %v433_v25 = vor.u32 %v432_v12, %v431_v18 }
 0x177   : > { %v445_v26 = vld [vmem:[#allocation2 + $0x6] ss:$32 sm:$0x1]  ;;  %v424_v28 = vld [vmem:[#allocation2 + $0x14] ss:$32 sm:$0x40] }
 0x178   : > { %v393_v8 = vor.u32 %v392_v62, %v391_v1  ;;  %v405_v9 = vor.u32 %v404_v63, %v403_v2  ;;  %v448_v27 = vld [vmem:[#allocation2 + $0x6] ss:$32 sm:$0x4]  ;;  %v436_v29 = vld [vmem:[#allocation2 + $0x15] ss:$32 sm:$0x10]  ;;  %v447_v33 = vor.u32 %v446_v20, %v445_v26 }
 0x179   : > { %769 = vrot.lane.b32.xlu1 %v299_v4, %s1250_s12  ;;  %v418_v4 = vld [vmem:[#allocation2 + $0x14] ss:$32 sm:$0x8]  ;;  %v462_v35 = vld [vmem:[#allocation2 + $0x7] ss:$32 sm:$0x2] }
 0x17a   : > { %v395_v15 = vor.u32 %v394_v6, %v393_v8  ;;  %v407_v16 = vor.u32 %v406_v7, %v405_v9  ;;  %v419_v17 = vor.u32 %v418_v4, %v417_v10  ;;  %v426_v36 = vld [vmem:[#allocation2 + $0x14] ss:$32 sm:$0x80]  ;;  %v438_v37 = vld [vmem:[#allocation2 + $0x15] ss:$32 sm:$0x20]  ;;  %v449_v40 = vor.u32 %v448_v27, %v447_v33 }
 0x17b   : > { %v461_v41 = vld [vmem:[#allocation2 + $0x7] ss:$32 sm:$0x1]  ;;  %v440_v43 = vld [vmem:[#allocation2 + $0x15] ss:$32 sm:$0x40] }
 0x17c   : > { %v409_v23 = vor.u32 %v408_v13, %v407_v16  ;;  %v421_v24 = vor.u32 %v420_v14, %v419_v17  ;;  %v464_v42 = vld [vmem:[#allocation2 + $0x7] ss:$32 sm:$0x4]  ;;  %v452_v44 = vld [vmem:[#allocation2 + $0x6] ss:$32 sm:$0x10]  ;;  %v463_v48 = vor.u32 %v462_v35, %v461_v41 }
 0x17d   : > { %777 = vrot.lane.b32.xlu1 %v331_v19, %s1243_s27  ;;  %v434_v19 = vld [vmem:[#allocation2 + $0x15] ss:$32 sm:$0x8]  ;;  %v478_v50 = vld [vmem:[#allocation2 + $0x16] ss:$32 sm:$0x2] }
 0x17e   : > { %v411_v30 = vor.u32 %v410_v21, %v409_v23  ;;  %v423_v31 = vor.u32 %v422_v22, %v421_v24  ;;  %v435_v32 = vor.u32 %v434_v19, %v433_v25  ;;  %v442_v51 = vld [vmem:[#allocation2 + $0x15] ss:$32 sm:$0x80]  ;;  %v454_v52 = vld [vmem:[#allocation2 + $0x6] ss:$32 sm:$0x20]  ;;  %v465_v55 = vor.u32 %v464_v42, %v463_v48 }
 0x17f   : > { %v477_v56 = vld [vmem:[#allocation2 + $0x16] ss:$32 sm:$0x1]  ;;  %v456_v58 = vld [vmem:[#allocation2 + $0x6] ss:$32 sm:$0x40] }
 0x180   : > { %v425_v38 = vor.u32 %v424_v28, %v423_v31  ;;  %v437_v39 = vor.u32 %v436_v29, %v435_v32  ;;  %v480_v57 = vld [vmem:[#allocation2 + $0x16] ss:$32 sm:$0x4]  ;;  %v468_v59 = vld [vmem:[#allocation2 + $0x7] ss:$32 sm:$0x10]  ;;  %v479_v63 = vor.u32 %v478_v50, %v477_v56 }
 0x181   : > { %781 = vrot.lane.b32.xlu1 %v347_v34, %s1245_s30  ;;  %v450_v34 = vld [vmem:[#allocation2 + $0x6] ss:$32 sm:$0x8]  ;;  %v494_v1 = vld [vmem:[#allocation2 + $0x17] ss:$32 sm:$0x2] }
 0x182   : > { %v427_v45 = vor.u32 %v426_v36, %v425_v38  ;;  %v439_v46 = vor.u32 %v438_v37, %v437_v39  ;;  %v451_v47 = vor.u32 %v450_v34, %v449_v40  ;;  %v458_v2 = vld [vmem:[#allocation2 + $0x6] ss:$32 sm:$0x80]  ;;  %v470_v3 = vld [vmem:[#allocation2 + $0x7] ss:$32 sm:$0x20]  ;;  %v481_v6 = vor.u32 %v480_v57, %v479_v63 }
 0x183   : > { %v493_v7 = vld [vmem:[#allocation2 + $0x17] ss:$32 sm:$0x1]  ;;  %v472_v9 = vld [vmem:[#allocation2 + $0x7] ss:$32 sm:$0x40] }
 0x184   : > { %v441_v53 = vor.u32 %v440_v43, %v439_v46  ;;  %v453_v54 = vor.u32 %v452_v44, %v451_v47  ;;  %v496_v8 = vld [vmem:[#allocation2 + $0x17] ss:$32 sm:$0x4]  ;;  %v484_v10 = vld [vmem:[#allocation2 + $0x16] ss:$32 sm:$0x10]  ;;  %v495_v14 = vor.u32 %v494_v1, %v493_v7 }
 0x185   : > { %785 = vrot.lane.b32.xlu1 %v363_v49, %s1251_s13  ;;  %v466_v49 = vld [vmem:[#allocation2 + $0x7] ss:$32 sm:$0x8]  ;;  %v486_v17 = vld [vmem:[#allocation2 + $0x16] ss:$32 sm:$0x20] }
 0x186   : > { %v443_v60 = vor.u32 %v442_v51, %v441_v53  ;;  %v455_v61 = vor.u32 %v454_v52, %v453_v54  ;;  %v467_v62 = vor.u32 %v466_v49, %v465_v55  ;;  %v474_v16 = vld [vmem:[#allocation2 + $0x7] ss:$32 sm:$0x80]  ;;  %v497_v20 = vor.u32 %v496_v8, %v495_v14  ;;  %v488_v21 = vld [vmem:[#allocation2 + $0x16] ss:$32 sm:$0x40] }
 0x187   : > { %v500_v22 = vld [vmem:[#allocation2 + $0x17] ss:$32 sm:$0x10]  ;;  %v490_v26 = vld [vmem:[#allocation2 + $0x16] ss:$32 sm:$0x80] }
 0x188   : > { %v457_v4 = vor.u32 %v456_v58, %v455_v61  ;;  %v469_v5 = vor.u32 %v468_v59, %v467_v62  ;;  %v502_v27 = vld [vmem:[#allocation2 + $0x17] ss:$32 sm:$0x20]  ;;  %v510_v40 = vld [vmem:[#allocation2 + $0x8] ss:$32 sm:$0x2] }
 0x189   : > { %789 = vrot.lane.b32.xlu1 %v379_v0, %s1252_s15  ;;  %v482_v0 = vld [vmem:[#allocation2 + $0x16] ss:$32 sm:$0x8]  ;;  %v506_v33 = vld [vmem:[#allocation2 + $0x17] ss:$32 sm:$0x80] }
 0x18a   : > { %v459_v11 = vor.u32 %v458_v2, %v457_v4  ;;  %v471_v12 = vor.u32 %v470_v3, %v469_v5  ;;  %v483_v13 = vor.u32 %v482_v0, %v481_v6  ;;  %v509_v41 = vld [vmem:[#allocation2 + $0x8] ss:$32 sm:$0x1]  ;;  %v254_v8 = vld [vmem:[#allocation2] ss:$32 sm:$0x2] }
 0x18b   : > { %v512_v42 = vld [vmem:[#allocation2 + $0x8] ss:$32 sm:$0x4]  ;;  %v511_v44 = vor.u32 %v510_v40, %v509_v41  ;;  %s150_s18 = scalar_lea.vmem [#allocation6], %s1040_s25  ;;  %s1161_s25 = sshll.u32 %s1258_s9, 4  ;;  %s1162_s25 = int_to_ptr.vmem [resolvable:$false] %s1161_s25 }
 0x18c   : > { %v473_v18 = vor.u32 %v472_v9, %v471_v12  ;;  %v485_v19 = vor.u32 %v484_v10, %v483_v13  ;;  %v516_v47 = vld [vmem:[#allocation2 + $0x8] ss:$32 sm:$0x10]  ;;  %v253_v12 = vld [vmem:[#allocation2] ss:$32 sm:$0x1] }
 0x18d   : > { %793 = vrot.lane.b32.xlu1 %v395_v15, %s1246_s2  ;;  %v498_v15 = vld [vmem:[#allocation2 + $0x17] ss:$32 sm:$0x8]  ;;  %v513_v46 = vor.u32 %v512_v42, %v511_v44  ;;  %v518_v50 = vld [vmem:[#allocation2 + $0x8] ss:$32 sm:$0x20]  ;;  %s1488_s2 = scalar_lea.hbm %s1538_s1, %s1043_s28 }
 0x18e   : > { %v475_v23 = vor.u32 %v474_v16, %v473_v18  ;;  %v487_v24 = vor.u32 %v486_v17, %v485_v19  ;;  %v499_v25 = vor.u32 %v498_v15, %v497_v20  ;;  %v520_v52 = vld [vmem:[#allocation2 + $0x8] ss:$32 sm:$0x40]  ;;  %v256_v13 = vld [vmem:[#allocation2] ss:$32 sm:$0x4]  ;;  %v255_v15 = vor.u32 %v254_v8, %v253_v12 }
 0x18f   : > { %v522_v55 = vld [vmem:[#allocation2 + $0x8] ss:$32 sm:$0x80]  ;;  %v258_v16 = vld [vmem:[#allocation2] ss:$32 sm:$0x8] }
 0x190   : > { %v489_v28 = vor.u32 %v488_v21, %v487_v24  ;;  %v501_v29 = vor.u32 %v500_v22, %v499_v25  ;;  %v257_v18 = vor.u32 %v256_v13, %v255_v15  ;;  %v260_v20 = vld [vmem:[#allocation2] ss:$32 sm:$0x10]  ;;  %s950_s27 = sshll.u32 %s150_s18, 4  ;;  %s1490_s27 = int_to_ptr.vmem [resolvable:$true] %s950_s27 }
 0x191   : > { %797 = vrot.lane.b32.xlu1 %v411_v30, %s1247_s3  ;;  %v504_v30 = vld [vmem:[#allocation2 + $0x17] ss:$32 sm:$0x40]  ;;  %v262_v22 = vld [vmem:[#allocation2] ss:$32 sm:$0x20]  ;;  %p1164_p7 = scmp.lt.s32.totalorder %s1490_s27, %s1162_s25 }
 0x192   : > { %v491_v31 = vor.u32 %v490_v26, %v489_v28  ;;  %v503_v32 = vor.u32 %v502_v27, %v501_v29  ;;  %v259_v21 = vor.u32 %v258_v16, %v257_v18  ;;  %v264_v27 = vld [vmem:[#allocation2] ss:$32 sm:$0x40]  ;;  %s936_s3 = scalar_lea.sflag [#allocation5], %s1380_s24 }
 0x193   : > { %v266_v29 = vld [vmem:[#allocation2] ss:$32 sm:$0x80] }
 0x194   : > { %v505_v34 = vor.u32 %v504_v30, %v503_v32  ;;  %v261_v25 = vor.u32 %v260_v20, %v259_v21 }
 0x195   : > { %801 = vrot.lane.b32.xlu1 %v427_v45, %s1253_s16  ;;  %v514_v45 = vld [vmem:[#allocation2 + $0x8] ss:$32 sm:$0x8] }
 0x196   : > { %v507_v35 = vor.u32 %v506_v33, %v505_v34  ;;  %v515_v49 = vor.u32 %v514_v45, %v513_v46  ;;  %v263_v28 = vor.u32 %v262_v22, %v261_v25 }
 0x198   : > { %v517_v51 = vor.u32 %v516_v47, %v515_v49  ;;  %v265_v30 = vor.u32 %v264_v27, %v263_v28 }
 0x199   : > { %805 = vrot.lane.b32.xlu1 %v443_v60, %s1254_s17 }
 0x19a   : > { %v519_v54 = vor.u32 %v518_v50, %v517_v51  ;;  %v267_v32 = vor.u32 %v266_v29, %v265_v30 }
 0x19c   : > { %v521_v56 = vor.u32 %v520_v52, %v519_v54 }
 0x19d   : > { %809 = vrot.lane.b32.xlu1 %v459_v11, %s1248_s4  ;;  %s1157_s4 = scalar_lea.vmem %s1490_s27, 128 }
 0x19e   : > { %v523_v58 = vor.u32 %v522_v55, %v521_v56  ;;  %p1158_p8 = scmp.ne.s32.totalorder %s1490_s27, %s1157_s4 }
 0x1a0   : > { %p1159_p11 = pnand %p1158_p8, %p1547_p9 }
 0x1a1   : > { %813 = vrot.lane.b32.xlu1 %v475_v23, %s1249_s5  ;;  %s1163_s5 = scalar_lea.vmem %s1162_s25, 256 }
 0x1a2   : > { %p1160_p0 = pneg %p1159_p11  ;;  %p1165_p13 = scmp.lt.s32.totalorder %s1163_s5, %s1157_s4 }
 0x1a4   : > { %p1166_p3 = por %p1165_p13, %p1164_p7 }
 0x1a5   : > { %817 = vrot.lane.b32.xlu1 %v491_v31, %s1255_s22 }
 0x1a6   : > { %p1167_p6 = pnand %p1166_p3, %p1160_p0 }
 0x1a9   : > { %821 = vrot.lane.b32.xlu1 %v507_v35, %s1256_s23 }
 0x1ab   : > { %v855_v36 = vpop.permute.xlu1 %854 }
 0x1ac   : > { %v913_v59 = vsel %vm220_vm0, %v523_v58, %v855_v36 }
 0x1af   : > { %v867_v37 = vpop.permute.xlu1 %866  ;;  %v774_v35 = vpop.permute.xlu0 %773 }
 0x1b3   : > { %v871_v38 = vpop.permute.xlu1 %870 }
 0x1b7   : > { %v883_v39 = vpop.permute.xlu1 %882 }
 0x1bb   : > { %v887_v43 = vpop.permute.xlu1 %886 }
 0x1bf   : > { %v899_v48 = vpop.permute.xlu1 %898 }
 0x1c3   : > { %v903_v53 = vpop.permute.xlu1 %902 }
 0x1c7   : > { %v859_v57 = vpop.permute.xlu1 %858 }
 0x1c8   : > { %v914_v60 = vsel %vm825_vm1, %v913_v59, %v859_v57 }
 0x1cb   : > { %v863_v61 = vpop.permute.xlu1 %862 }
 0x1cc   : > { %v915_v62 = vsel %vm827_vm2, %v914_v60, %v863_v61 }
 0x1cd   : > { %v916_v63 = vsel %vm829_vm3, %v915_v62, %v867_v37 }
 0x1ce   : > { %v917_v1 = vsel %vm831_vm4, %v916_v63, %v871_v38 }
 0x1cf   : > { %v875_v0 = vpop.permute.xlu1 %874 }
 0x1d0   : > { %v918_v2 = vsel %vm833_vm5, %v917_v1, %v875_v0 }
 0x1d3   : > { %v879_v3 = vpop.permute.xlu1 %878 }
 0x1d4   : > { %v919_v4 = vsel %vm835_vm6, %v918_v2, %v879_v3 }
 0x1d5   : > { %v920_v5 = vsel %vm837_vm7, %v919_v4, %v883_v39 }
 0x1d6   : > { %v921_v7 = vsel %vm839_vm8, %v920_v5, %v887_v43 }
 0x1d7   : > { %v891_v6 = vpop.permute.xlu1 %890 }
 0x1d8   : > { %v922_v9 = vsel %vm841_vm9, %v921_v7, %v891_v6 }
 0x1db   : > { %v895_v10 = vpop.permute.xlu1 %894 }
 0x1dc   : > { %v923_v11 = vsel %vm843_vm10, %v922_v9, %v895_v10 }
 0x1dd   : > { %v924_v14 = vsel %vm845_vm11, %v923_v11, %v899_v48 }
 0x1de   : > { %v925_v19 = vsel %vm847_vm12, %v924_v14, %v903_v53 }
 0x1df   : > { %v907_v17 = vpop.permute.xlu1 %906 }
 0x1e0   : > { %v926_v23 = vsel %vm849_vm13, %v925_v19, %v907_v17 }
 0x1e3   : > { %v911_v24 = vpop.permute.xlu1 %910 }
 0x1e4   : > { %v927_v26 = vsel %vm851_vm14, %v926_v23, %v911_v24 }
 0x1e5   : > { %929 = vrot.lane.b32.xlu1 %v927_v26, %s1257_s26 }
 0x1e7   : > { %v766_v31 = vpop.permute.xlu1 %765 }
 0x1e8   : > { %v824_v33 = vsel %vm220_vm0, %v267_v32, %v766_v31 }
 0x1eb   : > { %v770_v34 = vpop.permute.xlu1 %769 }
 0x1ec   : > { %v826_v36 = vsel %vm825_vm1, %v824_v33, %v770_v34 }
 0x1ed   : > { %v828_v37 = vsel %vm827_vm2, %v826_v36, %v774_v35 }
 0x1ef   : > { %v778_v38 = vpop.permute.xlu1 %777 }
 0x1f0   : > { %v830_v39 = vsel %vm829_vm3, %v828_v37, %v778_v38 }
 0x1f3   : > { %v782_v40 = vpop.permute.xlu1 %781 }
 0x1f4   : > { %v832_v41 = vsel %vm831_vm4, %v830_v39, %v782_v40 }
 0x1f7   : > { %v786_v42 = vpop.permute.xlu1 %785 }
 0x1f8   : > { %v834_v43 = vsel %vm833_vm5, %v832_v41, %v786_v42 }
 0x1fb   : > { %v790_v44 = vpop.permute.xlu1 %789 }
 0x1fc   : > { %v836_v45 = vsel %vm835_vm6, %v834_v43, %v790_v44 }
 0x1ff   : > { %v794_v46 = vpop.permute.xlu1 %793 }
 0x200   : > { %v838_v47 = vsel %vm837_vm7, %v836_v45, %v794_v46 }
 0x203   : > { %v798_v48 = vpop.permute.xlu1 %797 }
 0x204   : > { %v840_v49 = vsel %vm839_vm8, %v838_v47, %v798_v48 }
 0x207   : > { %v802_v50 = vpop.permute.xlu1 %801 }
 0x208   : > { %v842_v51 = vsel %vm841_vm9, %v840_v49, %v802_v50 }
 0x20b   : > { %v806_v52 = vpop.permute.xlu1 %805 }
 0x20c   : > { %v844_v53 = vsel %vm843_vm10, %v842_v51, %v806_v52 }
 0x20f   : > { %v810_v54 = vpop.permute.xlu1 %809 }
 0x210   : > { %v846_v55 = vsel %vm845_vm11, %v844_v53, %v810_v54 }
 0x213   : > { %v814_v56 = vpop.permute.xlu1 %813 }
 0x214   : > { %v848_v57 = vsel %vm847_vm12, %v846_v55, %v814_v56 }
 0x217   : > { %v818_v58 = vpop.permute.xlu1 %817 }
 0x218   : > { %v850_v59 = vsel %vm849_vm13, %v848_v57, %v818_v58 }
 0x21b   : > { %v822_v60 = vpop.permute.xlu1 %821 }
 0x21c   : > { %v852_v61 = vsel %vm851_vm14, %v850_v59, %v822_v60 }
 0x257   : > { %v930_v62 = vpop.permute.xlu1 %929 }
 0x258   : > { %v933_v63 = vsel %vm932_vm15, %v852_v61, %v930_v62 }
 0x259   : > { %934 = vst [vmem:[%s150_s18] sm:$0xff] %v933_v63 }
 0x25a   : > { %1170 = shalt.err (!%p1167_p6)
}
 0x25b   : > { %s1171_s24 = scalar_lea.hbm %s1488_s2, 128  ;;  %s1175_s15 = scalar_lea.hbm %s1538_s1, 256 }
 0x25c   : > { %p1172_p4 = scmp.ne.s32.totalorder %s1488_s2, %s1171_s24  ;;  %p1176_p1 = scmp.lt.u32.totalorder %s1488_s2, %s1538_s1 }
 0x25d   : > { %p1177_p2 = scmp.lt.u32.totalorder %s1175_s15, %s1171_s24  ;;  %p1179_p8 = scmp.lt.u32.totalorder %s1171_s24, %s1488_s2 }
 0x25e   : > { %p1173_p10 = pnand %p1172_p4, %p1547_p9 }
 0x25f   : > { %p1178_p5 = por %p1177_p2, %p1176_p1 }
 0x260   : > { %p1174_p12 = pneg %p1173_p10 }
 0x261   : > { %p1180_p11 = por %p1179_p8, %p1178_p5 }
 0x263   : > { %p1181_p0 = pnand %p1180_p11, %p1174_p12 }
 0x265   : > { %1184 = shalt.err (!%p1181_p0)
}
 0x266   : > { %1049 = dma.vmem_to_hbm [thread:$0]  (%p1547_p9), %s1490_s27, 128, %s1488_s2, %s936_s3  }
 0x267 PF: > { %s962_s22 = sand.u32 1, %s1219_s6   ;;  %p1548_p7 = scmp.ne.s32.totalorder %s1543_s21, 0 }
 0x268   : > { %p1549_p13 = scmp.ge.s32.totalorder %s1239_s11, 2  ;;  %s963_s23 = scalar_lea.sflag [#allocation5], %s962_s22 }
 0x26a   : > { %p1056_p3 = pnand %p1549_p13, %p1548_p7 }
 0x26c   : > { %1214 = dma.done.wait (!%p1056_p3), %s963_s23, 128  }
 0x26d   : > { %1216 = vsyncadd (!%p1056_p3), %s963_s23, 4294967168  ;;  %s17_s11 = sadd.s32 1, %s1239_s11   ;;  %s1550_s6 = smov %s1223_s7 }
 0x26e   : > { %p14_p6 = scmp.ge.s32.totalorder %s17_s11, 4   ;;  %s1551_s7 = smov %s1227_s8 }
 0x26f   : > { %s1552_s8 = smov %s1325_s20  ;;  %s1553_s9 = smov %s1235_s10 }
 0x270   : > { %s1554_s10 = smov %s1556_s14  ;;  %16 = sbr.rel (!%p14_p6) target bundleno = 6 (0x6), region = 100 }
 0x277   :  { %968 = vsyncpa [#allocation4], 1 }
 0x278   :  { %970 = vsyncpa [#allocation4 + $0x1], 1 }
 0x279   :  { %971 = vsyncpa [#allocation5], 1 }
 0x27a   :  { %973 = vsyncpa [#allocation5 + $0x1], 1 }

</bundles_post_ra>
